<compile_context>
chip_gen: v7x
topology: tpu7x:2x2x1
jax: 0.10.0
libtpu: 0.0.40
codegen_flags: <defaults>
</compile_context>

<pallas_src>
import functools
import math

import jax
import jax.numpy as jnp
from jax.experimental import pallas as pl
from jax.experimental.pallas import tpu as pltpu


# ------------------------------ Pallas kernel ------------------------------ #

def _shift_down(t, edge_mask):
    """Result row r is t[r-1]; row 0 (and masked image-top rows) is zero."""
    m, k = t.shape
    s = jnp.concatenate([jnp.zeros((1, k), t.dtype), t[:m - 1, :]], axis=0)
    if edge_mask is not None:
        s = jnp.where(edge_mask, jnp.zeros_like(s), s)
    return s


def _shift_up(t, edge_mask):
    """Result row r is t[r+1]; last row (and masked image-bottom rows) is zero."""
    m, k = t.shape
    s = jnp.concatenate([t[1:, :], jnp.zeros((1, k), t.dtype)], axis=0)
    if edge_mask is not None:
        s = jnp.where(edge_mask, jnp.zeros_like(s), s)
    return s


def _fused_block_kernel(stride1, project, nb, ho, *refs):
    """conv1+BN1+ReLU+conv2+BN2+(shortcut)+ReLU for NB images (rows flattened)."""
    if project:
        (x1_ref, B1_ref, b1_ref, B2_ref, b2_ref,
         sc_ref, Bs_ref, bs_ref, o_ref) = refs
    else:
        (x1_ref, B1_ref, b1_ref, B2_ref, b2_ref, sc_ref, o_ref) = refs

    f32 = jnp.float32
    mb = o_ref.shape[0]                      # NB * Ho rows in this block

    # Masks zeroing rows whose vertical tap crosses an image boundary.
    if nb > 1:
        ridx = jax.lax.broadcasted_iota(jnp.int32, (mb, 1), 0)
        top = (ridx % ho) == 0               # first row of each image
        bot = (ridx % ho) == (ho - 1)        # last row of each image
    else:                                    # one image per block: the shift's
        top = bot = None                     # inserted zero row already suffices

    # ---- conv1 (BN1 folded) + ReLU ----------------------------------------
    if stride1:
        xin = x1_ref[...]                    # (MB, (W+2)*Cin) bf16, W-padded rows
        # y1[i] = x[i-1]@B1[0] + x[i]@B1[1] + x[i+1]@B1[2]   (rows per image)
        y1 = _shift_down(jnp.dot(xin, B1_ref[0], preferred_element_type=f32), top)
        y1 = y1 + jnp.dot(xin, B1_ref[1], preferred_element_type=f32)
        y1 = y1 + _shift_up(jnp.dot(xin, B1_ref[2], preferred_element_type=f32), bot)
    else:
        # stride>1: all 9 taps + stride folded into one banded matmul (im2col rows).
        y1 = jnp.dot(x1_ref[...], B1_ref[...], preferred_element_type=f32)
    y1 = jnp.maximum(y1 + b1_ref[...], 0.0)  # (MB, Wp) f32

    # ---- conv2 (BN2 folded) ------------------------------------------------
    y1b = y1.astype(B2_ref.dtype)            # single f32->bf16 cast
    y2 = _shift_down(jnp.dot(y1b, B2_ref[0], preferred_element_type=f32), top)
    y2 = y2 + jnp.dot(y1b, B2_ref[1], preferred_element_type=f32)
    y2 = y2 + _shift_up(jnp.dot(y1b, B2_ref[2], preferred_element_type=f32), bot)
    y2 = y2 + b2_ref[...]

    # ---- shortcut + final ReLU ---------------------------------------------
    if project:
        sc = jnp.dot(sc_ref[...], Bs_ref[...], preferred_element_type=f32)
        sc = sc + bs_ref[...]
    else:
        sc = sc_ref[...].astype(f32)

    o_ref[...] = jnp.maximum(y2 + sc, 0.0).astype(o_ref.dtype)


# --------------------- host-side weight preprocessing ---------------------- #
# (pure glue on the *weights*: BN-fold + banded matrices; one-time work)

def _round_up(a, b):
    return (a + b - 1) // b * b


def _fold_bn(p):
    scale = p["gamma"] / jnp.sqrt(p["var"] + p["eps"])
    bias = p["beta"] - p["mean"] * scale
    return scale, bias


def _band_taps(w, win, wout, cin, cout, off):
    """Per-vertical-tap banded matrices for a 3x3 conv, stride 1.

    B[ky, xin*cin+ci, j*cout+co] = w[ky, xin - j + off, ci, co] (0<=kx<3 else 0)
    off=0: input rows are already W-padded (conv1).  off=1: unpadded (conv2).
    """
    xin = jnp.arange(win)
    j = jnp.arange(wout)
    kx = xin[:, None] - j[None, :] + off
    valid = (kx >= 0) & (kx < 3)
    B = w[:, jnp.clip(kx, 0, 2), :, :]               # (3, win, wout, cin, cout)
    B = jnp.where(valid[None, :, :, None, None], B, 0.0)
    return B.transpose(0, 1, 3, 2, 4).reshape(3, win * cin, wout * cout)


def _band_matrix_conv1(w1s, W, Wo, stride, Cin, Cout):
    """Strided conv1: stride + all 9 taps folded into one banded matrix."""
    xw = jnp.arange(W + 2)
    jout = jnp.arange(Wo)
    kx = xw[:, None] - stride * jout[None, :]
    valid = (kx >= 0) & (kx < 3)
    B = w1s[:, jnp.clip(kx, 0, 2), :, :]             # (3, W+2, Wo, Cin, Cout)
    B = jnp.where(valid[None, :, :, None, None], B, 0.0)
    return B.transpose(0, 1, 3, 2, 4).reshape(3 * (W + 2) * Cin, Wo * Cout)


def _block_diag_1x1(ws_s, Wo, Cin, Cout):
    eye = jnp.eye(Wo, dtype=ws_s.dtype)
    B = eye[:, None, :, None] * ws_s[None, :, None, :]   # (Wo, Cin, Wo, Cout)
    return B.reshape(Wo * Cin, Wo * Cout)


# ------------------------------ BasicBlock --------------------------------- #

@functools.partial(jax.jit, static_argnums=(2,))
def basic_block_forward(x_nchw, params, stride):
    """relu(conv-bn-relu-conv-bn(x) + shortcut(x)), NCHW in/out (inference BN)."""
    x = jnp.transpose(x_nchw, (0, 2, 3, 1))              # NCHW -> NHWC
    N, H, W, Cin = x.shape
    Cout = params["w2"].shape[-1]
    Ho = (H - 1) // stride + 1
    Wo = (W - 1) // stride + 1
    Wrow = Wo * Cout
    Wp = _round_up(Wrow, 128)                            # lane-dense output
    lane_pad = Wp - Wrow
    cdt = jnp.bfloat16                                   # MXU-native input dtype

    # Images per grid step: target M = NB*Ho >= ~256 rows, M a multiple of 8.
    NB = max(1, min(N, 256 // max(1, Ho)))
    NB = _round_up(NB, 8 // math.gcd(Ho, 8))
    N_pad = _round_up(N, NB)
    num_tiles = N_pad // NB
    MB = NB * Ho

    # Fold BN scales into conv weights; build banded weight matrices (pad lanes).
    s1, b1 = _fold_bn(params["bn1"])
    s2, b2 = _fold_bn(params["bn2"])
    w1s = params["w1"] * s1[None, None, None, :]
    w2s = params["w2"] * s2[None, None, None, :]

    if stride == 1:
        K1 = (W + 2) * Cin
        B1 = _band_taps(w1s, W + 2, Wo, Cin, Cout, off=0)      # (3, K1, Wrow)
        B1 = jnp.pad(B1, ((0, 0), (0, 0), (0, lane_pad))).astype(cdt)
    else:
        K1 = 3 * (W + 2) * Cin
        B1 = _band_matrix_conv1(w1s, W, Wo, stride, Cin, Cout)  # (K1, Wrow)
        B1 = jnp.pad(B1, ((0, 0), (0, lane_pad))).astype(cdt)
    B2 = _band_taps(w2s, Wo, Wo, Cout, Cout, off=1)             # (3, Wrow, Wrow)
    B2 = jnp.pad(B2, ((0, 0), (0, lane_pad), (0, lane_pad))).astype(cdt)
    b1r = jnp.pad(jnp.tile(b1, Wo), (0, lane_pad)).reshape(1, Wp).astype(jnp.float32)
    b2r = jnp.pad(jnp.tile(b2, Wo), (0, lane_pad)).reshape(1, Wp).astype(jnp.float32)

    # conv1 activation slab, flattened to (rows, lanes).
    if stride == 1:
        xw = jnp.pad(x, ((0, N_pad - N), (0, 0), (1, 1), (0, 0)))   # W-pad only
        x1 = xw.reshape(N_pad * Ho, K1).astype(cdt)
    else:
        # TODO(synk): stride>1 conv1 still gathers 3 strided row taps host-side
        # (small im2col); the common stride==1 case avoids it entirely.
        xp = jnp.pad(x, ((0, N_pad - N), (1, 1), (1, 1), (0, 0)))
        rows = [xp[:, ky:ky + stride * Ho:stride, :, :] for ky in range(3)]
        x1 = jnp.concatenate(rows, axis=2).reshape(N_pad * Ho, K1).astype(cdt)

    project = (stride != 1) or (Cin != Cout)
    row_map = lambda n: (n, 0)
    fix2 = lambda n: (0, 0)
    fix3 = lambda n: (0, 0, 0)
    b1_spec = pl.BlockSpec(tuple(B1.shape), fix3 if stride == 1 else fix2)

    if project:
        ss, bs = _fold_bn(params["bns"])
        ws_s = params["ws"] * ss[None, :]
        Bs = jnp.pad(_block_diag_1x1(ws_s, Wo, Cin, Cout),
                     ((0, 0), (0, lane_pad))).astype(cdt)
        bsr = jnp.pad(jnp.tile(bs, Wo), (0, lane_pad)).reshape(1, Wp).astype(jnp.float32)
        xb = jnp.pad(x, ((0, N_pad - N), (0, 0), (0, 0), (0, 0)))
        scs = xb[:, ::stride, ::stride, :].reshape(N_pad * Ho, Wo * Cin).astype(cdt)
        ins = (x1, B1, b1r, B2, b2r, scs, Bs, bsr)
        in_specs = [
            pl.BlockSpec((MB, K1), row_map),
            b1_spec,
            pl.BlockSpec((1, Wp), fix2),
            pl.BlockSpec((3, Wp, Wp), fix3),
            pl.BlockSpec((1, Wp), fix2),
            pl.BlockSpec((MB, Wo * Cin), row_map),
            pl.BlockSpec((Wo * Cin, Wp), fix2),
            pl.BlockSpec((1, Wp), fix2),
        ]
    else:
        # identity shortcut (stride==1, Cin==Cout): W*Cin == Wrow, kept in f32.
        xf = x.reshape(N, Ho, Wrow)
        scs = jnp.pad(xf, ((0, N_pad - N), (0, 0), (0, lane_pad)))
        scs = scs.reshape(N_pad * Ho, Wp)
        ins = (x1, B1, b1r, B2, b2r, scs)
        in_specs = [
            pl.BlockSpec((MB, K1), row_map),
            b1_spec,
            pl.BlockSpec((1, Wp), fix2),
            pl.BlockSpec((3, Wp, Wp), fix3),
            pl.BlockSpec((1, Wp), fix2),
            pl.BlockSpec((MB, Wp), row_map),
        ]

    out = pl.pallas_call(
        functools.partial(_fused_block_kernel, stride == 1, project, NB, Ho),
        out_shape=jax.ShapeDtypeStruct((N_pad * Ho, Wp), x.dtype),
        grid=(num_tiles,),
        in_specs=in_specs,
        out_specs=pl.BlockSpec((MB, Wp), row_map),
        compiler_params=pltpu.CompilerParams(
            dimension_semantics=("parallel",),           # megacore over batch tiles
            vmem_limit_bytes=48 * 1024 * 1024),
    )(*ins)

    out = out[:N * Ho, :Wrow].reshape(N, Ho, Wo, Cout)
    return jnp.transpose(out, (0, 3, 1, 2))              # NHWC -> NCHW


# ---------------------------- parameter init ------------------------------- #

def init_params(key, cin, cout):
    ks = jax.random.split(key, 12)

    def bn(k0, k1, k2, k3, c):
        return {
            "gamma": 1.0 + 0.1 * jax.random.normal(k0, (c,), jnp.float32),
            "beta": 0.1 * jax.random.normal(k1, (c,), jnp.float32),
            "mean": 0.1 * jax.random.normal(k2, (c,), jnp.float32),
            "var": 0.5 + jnp.abs(jax.random.normal(k3, (c,), jnp.float32)),
            "eps": 1e-5,
        }

    return {
        "w1": 0.1 * jax.random.normal(ks[0], (3, 3, cin, cout), jnp.float32),
        "w2": 0.1 * jax.random.normal(ks[1], (3, 3, cout, cout), jnp.float32),
        "ws": 0.1 * jax.random.normal(ks[2], (cin, cout), jnp.float32),
        "bn1": bn(ks[3], ks[4], ks[5], ks[6], cout),
        "bn2": bn(ks[7], ks[8], ks[9], ks[10], cout),
        "bns": bn(ks[11], ks[3], ks[7], ks[0], cout),
    }


# ------------------------- pure-JAX reference ------------------------------ #

def ref_forward(x_nchw, params, stride):
    def conv(x, w_hwio, s, pad):
        w = jnp.transpose(w_hwio, (3, 2, 0, 1))  # HWIO -> OIHW
        return jax.lax.conv_general_dilated(
            x, w, (s, s), [(pad, pad), (pad, pad)],
            dimension_numbers=("NCHW", "OIHW", "NCHW"))

    def bn(x, p):
        scale = p["gamma"] / jnp.sqrt(p["var"] + p["eps"])
        bias = p["beta"] - p["mean"] * scale
        return x * scale[None, :, None, None] + bias[None, :, None, None]

    cin = x_nchw.shape[1]
    cout = params["w2"].shape[-1]
    r = jax.nn.relu(bn(conv(x_nchw, params["w1"], stride, 1), params["bn1"]))
    r = bn(conv(r, params["w2"], 1, 1), params["bn2"])
    if stride != 1 or cin != cout:
        ws = params["ws"].reshape(1, 1, cin, cout)
        sc = bn(conv(x_nchw, ws, stride, 0), params["bns"])
    else:
        sc = x_nchw
    return jax.nn.relu(r + sc)


# --------------------------------- main ------------------------------------ #

if __name__ == "__main__":
    key = jax.random.PRNGKey(0)
    k_x, k_p, k_x2, k_p2 = jax.random.split(key, 4)

    # Case 1: stride-2 block with channel expansion (projected shortcut).
    N, Cin, Cout, H, W = 2, 4, 8, 16, 16
    x = jax.random.normal(k_x, (N, Cin, H, W), jnp.float32)
    params = init_params(k_p, Cin, Cout)
    out = jax.block_until_ready(basic_block_forward(x, params, 2))
    ref = ref_forward(x, params, 2)
    assert out.shape == ref.shape, (out.shape, ref.shape)
    err = float(jnp.max(jnp.abs(out - ref)))
    assert jnp.allclose(out, ref, atol=5e-2, rtol=5e-2), err   # bf16 matmuls

    # Case 2: stride-1 block with identity shortcut (banded conv1 path).
    x2 = jax.random.normal(k_x2, (N, Cout, H, W), jnp.float32)
    params2 = init_params(k_p2, Cout, Cout)
    out2 = jax.block_until_ready(basic_block_forward(x2, params2, 1))
    ref2 = ref_forward(x2, params2, 1)
    assert out2.shape == ref2.shape, (out2.shape, ref2.shape)
    err2 = float(jnp.max(jnp.abs(out2 - ref2)))
    assert jnp.allclose(out2, ref2, atol=5e-2, rtol=5e-2), err2

    # Case 3: stride-1 block with channel expansion (projection, no stride).
    x3 = jax.random.normal(k_x, (N, Cin, H, W), jnp.float32)
    params3 = init_params(k_p2, Cin, Cout)
    out3 = jax.block_until_ready(basic_block_forward(x3, params3, 1))
    ref3 = ref_forward(x3, params3, 1)
    assert out3.shape == ref3.shape, (out3.shape, ref3.shape)
    err3 = float(jnp.max(jnp.abs(out3 - ref3)))
    assert jnp.allclose(out3, ref3, atol=5e-2, rtol=5e-2), err3

    print("KERNEL_OK")
</pallas_src>

<mosaic_0001>
module attributes {stable_mosaic.version = 11 : i64} {
  func.func @_fused_block_kernel(%arg0: i32, %arg1: memref<16x216xbf16, #tpu.memory_space<vmem>>, %arg2: memref<216x128xbf16, #tpu.memory_space<vmem>>, %arg3: memref<1x128xf32, #tpu.memory_space<vmem>>, %arg4: memref<3x128x128xbf16, #tpu.memory_space<vmem>>, %arg5: memref<1x128xf32, #tpu.memory_space<vmem>>, %arg6: memref<16x32xbf16, #tpu.memory_space<vmem>>, %arg7: memref<32x128xbf16, #tpu.memory_space<vmem>>, %arg8: memref<1x128xf32, #tpu.memory_space<vmem>>, %arg9: memref<16x128xf32, #tpu.memory_space<vmem>>) attributes {dimension_semantics = [#tpu.dimension_semantics<parallel>], iteration_bounds = array<i64: 1>, scalar_prefetch = 0 : i64, scratch_operands = 0 : i64, tpu.core_type = #tpu.core_type<tc>, window_params = [{transform_indices = @transform_0, window_bounds = array<i64: 16, 216>}, {pipeline_mode = #tpu.pipeline_mode<synchronous>, transform_indices = @transform_1, window_bounds = array<i64: 216, 128>}, {pipeline_mode = #tpu.pipeline_mode<synchronous>, transform_indices = @transform_2, window_bounds = array<i64: 1, 128>}, {pipeline_mode = #tpu.pipeline_mode<synchronous>, transform_indices = @transform_3, window_bounds = array<i64: 3, 128, 128>}, {pipeline_mode = #tpu.pipeline_mode<synchronous>, transform_indices = @transform_4, window_bounds = array<i64: 1, 128>}, {transform_indices = @transform_5, window_bounds = array<i64: 16, 32>}, {pipeline_mode = #tpu.pipeline_mode<synchronous>, transform_indices = @transform_6, window_bounds = array<i64: 32, 128>}, {pipeline_mode = #tpu.pipeline_mode<synchronous>, transform_indices = @transform_7, window_bounds = array<i64: 1, 128>}, {transform_indices = @transform_8, window_bounds = array<i64: 16, 128>}]} {
    %0 = tpu.iota {dimensions = array<i32: 0>} : vector<16x1xi32>
    %c8_i32 = arith.constant 8 : i32
    %c0_i32 = arith.constant 0 : i32
    %1 = arith.cmpi eq, %c8_i32, %c0_i32 : i32
    %c1_i32 = arith.constant 1 : i32
    %2 = arith.select %1, %c1_i32, %c8_i32 : i32
    %3 = vector.broadcast %2 : i32 to vector<16x1xi32>
    %4 = arith.remsi %0, %3 : vector<16x1xi32>
    %c0_i32_0 = arith.constant 0 : i32
    %5 = vector.broadcast %c0_i32_0 : i32 to vector<16x1xi32>
    %6 = arith.cmpi ne, %4, %5 : vector<16x1xi32>
    %c0_i32_1 = arith.constant 0 : i32
    %7 = vector.broadcast %c0_i32_1 : i32 to vector<16x1xi32>
    %8 = arith.cmpi slt, %4, %7 : vector<16x1xi32>
    %c0_i32_2 = arith.constant 0 : i32
    %9 = arith.cmpi slt, %2, %c0_i32_2 : i32
    %10 = vector.broadcast %9 : i1 to vector<16x1xi1>
    %11 = vector.broadcast %10 : vector<16x1xi1> to vector<16x1xi1>
    %12 = arith.xori %8, %11 : vector<16x1xi1>
    %13 = arith.andi %12, %6 : vector<16x1xi1>
    %14 = vector.broadcast %2 : i32 to vector<16x1xi32>
    %15 = arith.addi %4, %14 : vector<16x1xi32>
    %16 = arith.select %13, %15, %4 : vector<16x1xi1>, vector<16x1xi32>
    %c0_i32_3 = arith.constant 0 : i32
    %17 = vector.broadcast %c0_i32_3 : i32 to vector<16x1xi32>
    %18 = arith.cmpi eq, %16, %17 : vector<16x1xi32>
    %c8_i32_4 = arith.constant 8 : i32
    %c0_i32_5 = arith.constant 0 : i32
    %19 = arith.cmpi eq, %c8_i32_4, %c0_i32_5 : i32
    %c1_i32_6 = arith.constant 1 : i32
    %20 = arith.select %19, %c1_i32_6, %c8_i32_4 : i32
    %21 = vector.broadcast %20 : i32 to vector<16x1xi32>
    %22 = arith.remsi %0, %21 : vector<16x1xi32>
    %c0_i32_7 = arith.constant 0 : i32
    %23 = vector.broadcast %c0_i32_7 : i32 to vector<16x1xi32>
    %24 = arith.cmpi ne, %22, %23 : vector<16x1xi32>
    %c0_i32_8 = arith.constant 0 : i32
    %25 = vector.broadcast %c0_i32_8 : i32 to vector<16x1xi32>
    %26 = arith.cmpi slt, %22, %25 : vector<16x1xi32>
    %c0_i32_9 = arith.constant 0 : i32
    %27 = arith.cmpi slt, %20, %c0_i32_9 : i32
    %28 = vector.broadcast %27 : i1 to vector<16x1xi1>
    %29 = vector.broadcast %28 : vector<16x1xi1> to vector<16x1xi1>
    %30 = arith.xori %26, %29 : vector<16x1xi1>
    %31 = arith.andi %30, %24 : vector<16x1xi1>
    %32 = vector.broadcast %20 : i32 to vector<16x1xi32>
    %33 = arith.addi %22, %32 : vector<16x1xi32>
    %34 = arith.select %31, %33, %22 : vector<16x1xi1>, vector<16x1xi32>
    %c7_i32 = arith.constant 7 : i32
    %35 = vector.broadcast %c7_i32 : i32 to vector<16x1xi32>
    %36 = arith.cmpi eq, %34, %35 : vector<16x1xi32>
    %c0 = arith.constant 0 : index
    %c0_10 = arith.constant 0 : index
    %37 = vector.load %arg1[%c0, %c0_10] : memref<16x216xbf16, #tpu.memory_space<vmem>>, vector<16x216xbf16>
    %c0_11 = arith.constant 0 : index
    %c0_12 = arith.constant 0 : index
    %38 = vector.load %arg2[%c0_11, %c0_12] : memref<216x128xbf16, #tpu.memory_space<vmem>>, vector<216x128xbf16>
    %cst = arith.constant dense<0.000000e+00> : vector<16x128xf32>
    %39 = tpu.matmul %37, %38, %cst {dimension_numbers = #tpu.dot_dimension_numbers<[1], [0], [0], [1], [0, 0, 1, 1], [], []>} : vector<16x216xbf16>, vector<216x128xbf16>, vector<16x128xf32> -> vector<16x128xf32>
    %c0_13 = arith.constant 0 : index
    %c0_14 = arith.constant 0 : index
    %40 = vector.load %arg3[%c0_13, %c0_14] : memref<1x128xf32, #tpu.memory_space<vmem>>, vector<1x128xf32>
    %41 = vector.broadcast %40 : vector<1x128xf32> to vector<16x128xf32>
    %42 = arith.addf %39, %41 : vector<16x128xf32>
    %cst_15 = arith.constant 0.000000e+00 : f32
    %43 = vector.broadcast %cst_15 : f32 to vector<16x128xf32>
    %44 = arith.maximumf %42, %43 : vector<16x128xf32>
    %45 = arith.truncf %44 : vector<16x128xf32> to vector<16x128xbf16>
    %c0_16 = arith.constant 0 : index
    %c0_17 = arith.constant 0 : index
    %c0_18 = arith.constant 0 : index
    %46 = vector.load %arg4[%c0_16, %c0_17, %c0_18] : memref<3x128x128xbf16, #tpu.memory_space<vmem>>, vector<1x128x128xbf16>
    %47 = vector.shape_cast %46 : vector<1x128x128xbf16> to vector<128x128xbf16>
    %cst_19 = arith.constant dense<0.000000e+00> : vector<16x128xf32>
    %48 = tpu.matmul %45, %47, %cst_19 {dimension_numbers = #tpu.dot_dimension_numbers<[1], [0], [0], [1], [0, 0, 1, 1], [], []>} : vector<16x128xbf16>, vector<128x128xbf16>, vector<16x128xf32> -> vector<16x128xf32>
    %cst_20 = arith.constant 0.000000e+00 : f32
    %49 = vector.broadcast %cst_20 : f32 to vector<1x128xf32>
    %50 = vector.extract_strided_slice %48 {offsets = [0, 0], sizes = [15, 128], strides = [1, 1]} : vector<16x128xf32> to vector<15x128xf32>
    %51 = tpu.concatenate %49, %50 in 0 : vector<1x128xf32>, vector<15x128xf32> -> vector<16x128xf32>
    %cst_21 = arith.constant 0.000000e+00 : f32
    %52 = vector.broadcast %cst_21 : f32 to vector<16x128xf32>
    %53 = vector.shape_cast %18 : vector<16x1xi1> to vector<16x1xi1>
    %54 = vector.broadcast %53 : vector<16x1xi1> to vector<16x128xi1>
    %55 = arith.select %54, %52, %51 : vector<16x128xi1>, vector<16x128xf32>
    %c1 = arith.constant 1 : index
    %c0_22 = arith.constant 0 : index
    %c0_23 = arith.constant 0 : index
    %56 = vector.load %arg4[%c1, %c0_22, %c0_23] : memref<3x128x128xbf16, #tpu.memory_space<vmem>>, vector<1x128x128xbf16>
    %57 = vector.shape_cast %56 : vector<1x128x128xbf16> to vector<128x128xbf16>
    %cst_24 = arith.constant dense<0.000000e+00> : vector<16x128xf32>
    %58 = tpu.matmul %45, %57, %cst_24 {dimension_numbers = #tpu.dot_dimension_numbers<[1], [0], [0], [1], [0, 0, 1, 1], [], []>} : vector<16x128xbf16>, vector<128x128xbf16>, vector<16x128xf32> -> vector<16x128xf32>
    %59 = arith.addf %55, %58 : vector<16x128xf32>
    %c2 = arith.constant 2 : index
    %c0_25 = arith.constant 0 : index
    %c0_26 = arith.constant 0 : index
    %60 = vector.load %arg4[%c2, %c0_25, %c0_26] : memref<3x128x128xbf16, #tpu.memory_space<vmem>>, vector<1x128x128xbf16>
    %61 = vector.shape_cast %60 : vector<1x128x128xbf16> to vector<128x128xbf16>
    %cst_27 = arith.constant dense<0.000000e+00> : vector<16x128xf32>
    %62 = tpu.matmul %45, %61, %cst_27 {dimension_numbers = #tpu.dot_dimension_numbers<[1], [0], [0], [1], [0, 0, 1, 1], [], []>} : vector<16x128xbf16>, vector<128x128xbf16>, vector<16x128xf32> -> vector<16x128xf32>
    %63 = vector.extract_strided_slice %62 {offsets = [1, 0], sizes = [15, 128], strides = [1, 1]} : vector<16x128xf32> to vector<15x128xf32>
    %cst_28 = arith.constant 0.000000e+00 : f32
    %64 = vector.broadcast %cst_28 : f32 to vector<1x128xf32>
    %65 = tpu.concatenate %63, %64 in 0 : vector<15x128xf32>, vector<1x128xf32> -> vector<16x128xf32>
    %cst_29 = arith.constant 0.000000e+00 : f32
    %66 = vector.broadcast %cst_29 : f32 to vector<16x128xf32>
    %67 = vector.shape_cast %36 : vector<16x1xi1> to vector<16x1xi1>
    %68 = vector.broadcast %67 : vector<16x1xi1> to vector<16x128xi1>
    %69 = arith.select %68, %66, %65 : vector<16x128xi1>, vector<16x128xf32>
    %70 = arith.addf %59, %69 : vector<16x128xf32>
    %c0_30 = arith.constant 0 : index
    %c0_31 = arith.constant 0 : index
    %71 = vector.load %arg5[%c0_30, %c0_31] : memref<1x128xf32, #tpu.memory_space<vmem>>, vector<1x128xf32>
    %72 = vector.broadcast %71 : vector<1x128xf32> to vector<16x128xf32>
    %73 = arith.addf %70, %72 : vector<16x128xf32>
    %c0_32 = arith.constant 0 : index
    %c0_33 = arith.constant 0 : index
    %74 = vector.load %arg6[%c0_32, %c0_33] : memref<16x32xbf16, #tpu.memory_space<vmem>>, vector<16x32xbf16>
    %c0_34 = arith.constant 0 : index
    %c0_35 = arith.constant 0 : index
    %75 = vector.load %arg7[%c0_34, %c0_35] : memref<32x128xbf16, #tpu.memory_space<vmem>>, vector<32x128xbf16>
    %cst_36 = arith.constant dense<0.000000e+00> : vector<16x128xf32>
    %76 = tpu.matmul %74, %75, %cst_36 {dimension_numbers = #tpu.dot_dimension_numbers<[1], [0], [0], [1], [0, 0, 1, 1], [], []>} : vector<16x32xbf16>, vector<32x128xbf16>, vector<16x128xf32> -> vector<16x128xf32>
    %c0_37 = arith.constant 0 : index
    %c0_38 = arith.constant 0 : index
    %77 = vector.load %arg8[%c0_37, %c0_38] : memref<1x128xf32, #tpu.memory_space<vmem>>, vector<1x128xf32>
    %78 = vector.broadcast %77 : vector<1x128xf32> to vector<16x128xf32>
    %79 = arith.addf %76, %78 : vector<16x128xf32>
    %80 = arith.addf %73, %79 : vector<16x128xf32>
    %cst_39 = arith.constant 0.000000e+00 : f32
    %81 = vector.broadcast %cst_39 : f32 to vector<16x128xf32>
    %82 = arith.maximumf %80, %81 : vector<16x128xf32>
    %c0_40 = arith.constant 0 : index
    %c0_41 = arith.constant 0 : index
    %83 = vector.load %arg9[%c0_40, %c0_41] : memref<16x128xf32, #tpu.memory_space<vmem>>, vector<16x128xf32>
    tpu.vector_store %arg9[%c0_40, %c0_41], %82 {strides = array<i32>} : memref<16x128xf32, #tpu.memory_space<vmem>>, vector<16x128xf32>,
    return
  }
  func.func @transform_0(%arg0: i32) -> (i32, i32) {
    %c0_i32 = arith.constant 0 : i32
    %c0_i32_0 = arith.constant 0 : i32
    return %arg0, %c0_i32 : i32, i32
  }
  func.func @transform_1(%arg0: i32) -> (i32, i32) {
    %c0_i32 = arith.constant 0 : i32
    %c0_i32_0 = arith.constant 0 : i32
    %c0_i32_1 = arith.constant 0 : i32
    return %c0_i32, %c0_i32_0 : i32, i32
  }
  func.func @transform_2(%arg0: i32) -> (i32, i32) {
    %c0_i32 = arith.constant 0 : i32
    %c0_i32_0 = arith.constant 0 : i32
    %c0_i32_1 = arith.constant 0 : i32
    return %c0_i32, %c0_i32_0 : i32, i32
  }
  func.func @transform_3(%arg0: i32) -> (i32, i32, i32) {
    %c0_i32 = arith.constant 0 : i32
    %c0_i32_0 = arith.constant 0 : i32
    %c0_i32_1 = arith.constant 0 : i32
    %c0_i32_2 = arith.constant 0 : i32
    return %c0_i32, %c0_i32_0, %c0_i32_1 : i32, i32, i32
  }
  func.func @transform_4(%arg0: i32) -> (i32, i32) {
    %c0_i32 = arith.constant 0 : i32
    %c0_i32_0 = arith.constant 0 : i32
    %c0_i32_1 = arith.constant 0 : i32
    return %c0_i32, %c0_i32_0 : i32, i32
  }
  func.func @transform_5(%arg0: i32) -> (i32, i32) {
    %c0_i32 = arith.constant 0 : i32
    %c0_i32_0 = arith.constant 0 : i32
    return %arg0, %c0_i32 : i32, i32
  }
  func.func @transform_6(%arg0: i32) -> (i32, i32) {
    %c0_i32 = arith.constant 0 : i32
    %c0_i32_0 = arith.constant 0 : i32
    %c0_i32_1 = arith.constant 0 : i32
    return %c0_i32, %c0_i32_0 : i32, i32
  }
  func.func @transform_7(%arg0: i32) -> (i32, i32) {
    %c0_i32 = arith.constant 0 : i32
    %c0_i32_0 = arith.constant 0 : i32
    %c0_i32_1 = arith.constant 0 : i32
    return %c0_i32, %c0_i32_0 : i32, i32
  }
  func.func @transform_8(%arg0: i32) -> (i32, i32) {
    %c0_i32 = arith.constant 0 : i32
    %c0_i32_0 = arith.constant 0 : i32
    return %arg0, %c0_i32 : i32, i32
  }
}

</mosaic_0001>

<bundles_post_ra>
// kernel: tile.23
= control target key start
LH: loop header
LB: loop body
LE: loop exit
PB: predicated region body
PF: predicated region fallthrough
CT: control target
= control target key end

     0   :  { %s22_s0 = inlined_call_operand.vmem [shape: f32[8], index: 0, kind: input, shape index: {}]   ;;  %s23_s1 = inlined_call_operand.vmem [shape: f32[8,8], index: 1, kind: output, shape index: {}]  }
   0x1   :  { %v4_v0 = vld [vmem:[%s22_s0] ss:$0 sm:$0xff] }
   0x2   :  { %5 = vst [vmem:[%s23_s1] sm:$0xff] %v4_v0 }

// kernel: tile.24
= control target key start
LH: loop header
LB: loop body
LE: loop exit
PB: predicated region body
PF: predicated region fallthrough
CT: control target
= control target key end

     0   :  { %s67_s10 = smov 56   ;;  %s68_s11 = smov 40   ;;  %vm3_vm0 = vcmask 64512   ;;  %vm9_vm1 = vcmask 523712   ;;  %vm15_vm2 = vcmask 458112   ;;  %vm21_vm3 = vcmask 392512   ;;  %s111_s0 = inlined_call_operand.vmem [shape: f32[8,8], index: 0, kind: input, shape index: {}]   ;;  %s112_s1 = inlined_call_operand.vmem [shape: f32[64], index: 1, kind: output, shape index: {}]  }
   0x1   :  { %v53_v0 = vld [vmem:[%s111_s0 + $0x7] sm:$0x1]   ;;  %v55_v1 = vld [vmem:[%s111_s0 + $0x5] sm:$0x1]   ;;  %v54_v2 = vld [vmem:[%s111_s0 + $0x6] sm:$0x1]  }
   0x2   :  { %7 = vrot.lane.b32.xlu0 %v53_v0, %s67_s10  ;;  %19 = vrot.lane.b32.xlu1 %v55_v1, %s68_s11  ;;  %v56_v3 = vld [vmem:[%s111_s0 + $0x4] sm:$0x1]   ;;  %v2_v4 = vld [vmem:[%s111_s0] sm:$0x1]   ;;  %s69_s18 = smov 48   ;;  %s70_s19 = smov 32  }
   0x3   :  { %4 = vst.msk [vmem:[#allocation0] sm:$0x1] %vm3_vm0, %v2_v4   ;;  %v57_v5 = vld [vmem:[%s111_s0 + $0x3] sm:$0x1]   ;;  %v58_v6 = vld [vmem:[%s111_s0 + $0x2] sm:$0x1]  }
   0x4   :  { %s71_s24 = smov 24   ;;  %s72_s25 = smov 16   ;;  %v59_v7 = vld [vmem:[%s111_s0 + $0x1] sm:$0x1]   ;;  %vm27_vm4 = vcmask 326912   ;;  %vm33_vm5 = vcmask 261312  }
   0x5   :  { %s73_s0 = smov 8   ;;  %vm39_vm6 = vcmask 195712   ;;  %vm45_vm7 = vcmask 130112  }
   0x6   :  { %13 = vrot.lane.b32.xlu0 %v54_v2, %s69_s18  ;;  %25 = vrot.lane.b32.xlu1 %v56_v3, %s70_s19 }
   0xa   :  { %31 = vrot.lane.b32.xlu0 %v57_v5, %s71_s24  ;;  %37 = vrot.lane.b32.xlu1 %v58_v6, %s72_s25 }
   0xe   :  { %43 = vrot.lane.b32.xlu0 %v59_v7, %s73_s0 }
  0x74   :  { %v8_v8 = vpop.permute.xlu0 %7   ;;  %v20_v9 = vpop.permute.xlu1 %19  }
  0x75   :  { %10 = vst.msk [vmem:[#allocation0] sm:$0x1] %vm9_vm1, %v8_v8  }
  0x78   :  { %v14_v10 = vpop.permute.xlu0 %13   ;;  %v26_v11 = vpop.permute.xlu1 %25  }
  0x79   :  { %16 = vst.msk [vmem:[#allocation0] sm:$0x1] %vm15_vm2, %v14_v10  }
  0x7a   :  { %22 = vst.msk [vmem:[#allocation0] sm:$0x1] %vm21_vm3, %v20_v9  }
  0x7b   :  { %28 = vst.msk [vmem:[#allocation0] sm:$0x1] %vm27_vm4, %v26_v11  }
  0x7c   :  { %v32_v12 = vpop.permute.xlu0 %31   ;;  %v38_v13 = vpop.permute.xlu1 %37  }
  0x7d   :  { %34 = vst.msk [vmem:[#allocation0] sm:$0x1] %vm33_vm5, %v32_v12  }
  0x7e   :  { %40 = vst.msk [vmem:[#allocation0] sm:$0x1] %vm39_vm6, %v38_v13  }
  0x80   :  { %v44_v14 = vpop.permute.xlu0 %43  }
  0x81   :  { %46 = vst.msk [vmem:[#allocation0] sm:$0x1] %vm45_vm7, %v44_v14  }
  0x88   :  { %v50_v15 = vld [vmem:[#allocation0] sm:$0x1] }
  0x89   :  { %52 = vst [vmem:[%s112_s1] sm:$0x1] %v50_v15 }

// kernel: basic_block_forward.1
= control target key start
LH: loop header
LB: loop body
LE: loop exit
PB: predicated region body
PF: predicated region fallthrough
CT: control target
= control target key end

     0   :  { %v921_v0 = vmov 0   ;;  %v922_v2 = vmov 0.0   ;;  %vm187_vm0 = vcmask 719872   ;;  %vm191_vm1 = vcmask 1043456   ;;  %s1187_s1 = inlined_call_operand.vmem [shape: bf16[216,128], index: 1, kind: input, shape index: {}]   ;;  %s1188_s0 = inlined_call_operand.vmem [shape: bf16[16,216], index: 0, kind: input, shape index: {}]   ;;  %s1189_s3 = inlined_call_operand.vmem [shape: bf16[3,128,128], index: 3, kind: input, shape index: {}]   ;;  %s1190_s6 = inlined_call_operand.vmem [shape: bf16[32,128], index: 6, kind: input, shape index: {}]   ;;  %s1191_s5 = inlined_call_operand.vmem [shape: bf16[16,32], index: 5, kind: input, shape index: {}]   ;;  %s1192_s2 = inlined_call_operand.vmem [shape: f32[1,128], index: 2, kind: input, shape index: {}]   ;;  %s1193_s4 = inlined_call_operand.vmem [shape: f32[1,128], index: 4, kind: input, shape index: {}]   ;;  %s1194_s7 = inlined_call_operand.vmem [shape: f32[1,128], index: 7, kind: input, shape index: {}]   ;;  %s1195_s8 = inlined_call_operand.vmem [shape: f32[16,128], index: 8, kind: output, shape index: {}]  }
   0x1   :  { %195 = vmatprep.subr.bf16.mxu0 %v921_v0  ;;  %v877_v1 = vld [vmem:[%s1187_s1] sm:$0xff]   ;;  %794 = vmatprep.subr.bf16.mxu1 %v922_v2  ;;  %v878_v3 = vld [vmem:[%s1187_s1 + $0x8] sm:$0xff]   ;;  %v879_v4 = vld [vmem:[%s1187_s1 + $0x10] sm:$0xff]   ;;  %vm923_vm2 = vmmov 0   ;;  %vm629_vm3 = vcmask 261120   ;;  %v30_v56 = vlaneseq  ;;  %vm346_vm4 = vcmask 1040384  }
   0x2   :  { %196 = vmatpush1.bf16.msra.mxu0 %v877_v1  ;;  %v880_v5 = vld [vmem:[%s1187_s1 + $0x18] sm:$0xff]   ;;  %v881_v6 = vld [vmem:[%s1187_s1 + $0x20] sm:$0xff]   ;;  %v896_v9 = vld [vmem:[%s1189_s3 + $0x8] sm:$0xff]   ;;  %810 = vmatprep.mubr.msk.bf16.mxu1 %vm923_vm2, %v922_v2  ;;  %vm575_vm9 = vcmask 1046528  }
   0x3   :  { %197 = vmatprep.subr.bf16.mxu0 %v921_v0  ;;  %v893_v7 = vld [vmem:[%s1188_s0 + $0x4] ss:$8 sps:$4 sm:$0xff]   ;;  %v898_v11 = vld [vmem:[%s1189_s3 + $0x10] sm:$0xff]   ;;  %v900_v13 = vld [vmem:[%s1189_s3 + $0x18] sm:$0xff]   ;;  %v31_v57 = vshrl.u32 %v30_v56, 7 }
   0x4   :  { %v894_v8 = vld [vmem:[%s1189_s3] sm:$0xff]   ;;  %701 = vmatprep.mubr.msk.bf16.mxu0 %vm187_vm0, %v893_v7  ;;  %v882_v10 = vld [vmem:[%s1187_s1 + $0x28] sm:$0xff]   ;;  %v883_v12 = vld [vmem:[%s1187_s1 + $0x30] sm:$0xff]  }
   0x5   :  { %795 = vmatpush3.bf16.msra.mxu1 %v894_v8  ;;  %v884_v14 = vld [vmem:[%s1187_s1 + $0x38] sm:$0xff]   ;;  %v902_v15 = vld [vmem:[%s1189_s3 + $0x20] sm:$0xff]   ;;  %v904_v17 = vld [vmem:[%s1189_s3 + $0x28] sm:$0xff]   ;;  %v32_v58 = vadd.s32 8, %v31_v57  ;;  %v37_v59 = vand.u32 7, %v31_v57 }
   0x6   :  { %198 = vmatpush1.bf16.msra.mxu0 %v878_v3  ;;  %796 = vmatprep.subr.bf16.mxu1 %v922_v2  ;;  %v885_v16 = vld [vmem:[%s1187_s1 + $0x40] sm:$0xff]   ;;  %v886_v18 = vld [vmem:[%s1187_s1 + $0x48] sm:$0xff]   ;;  %v887_v19 = vld [vmem:[%s1187_s1 + $0x50] sm:$0xff]  }
   0x7   :  { %199 = vmatprep.subr.bf16.mxu0 %v921_v0  ;;  %v888_v20 = vld [vmem:[%s1187_s1 + $0x58] sm:$0xff]   ;;  %v889_v21 = vld [vmem:[%s1187_s1 + $0x60] sm:$0xff]   ;;  %v890_v22 = vld [vmem:[%s1187_s1 + $0x68] ss:$0 sps:$4 sm:$0xff]   ;;  %v44_v60 = vand.u32 7, %v32_v58  ;;  %vm1149_vm5 = vcmp.eq.s32.totalorder %v37_v59, 0 }
   0x8   :  { %v193_v23 = vsel %vm191_vm1, %v890_v22, 0  ;;  %v891_v24 = vld [vmem:[%s1188_s0] ss:$8 sps:$4 sm:$0xff]   ;;  %v899_v27 = vld [vmem:[%s1189_s3 + $0x90] sm:$0xff]   ;;  %v901_v28 = vld [vmem:[%s1189_s3 + $0x98] sm:$0xff]   ;;  %vm1157_vm7 = vcmp.eq.s32.totalorder %v37_v59, 7 }
   0x9   :  { %797 = vmatpush3.bf16.msra.mxu1 %v896_v9  ;;  %v895_v25 = vld [vmem:[%s1189_s3 + $0x80] sm:$0xff]   ;;  %v897_v26 = vld [vmem:[%s1189_s3 + $0x88] sm:$0xff]   ;;  %v906_v31 = vld [vmem:[%s1189_s3 + $0x30] sm:$0xff]   ;;  %vm1153_vm6 = vcmp.eq.s32.totalorder %v44_v60, 0  ;;  %vm1161_vm8 = vcmp.eq.s32.totalorder %v44_v60, 7 }
   0xa   :  { %200 = vmatpush1.bf16.msra.mxu0 %v879_v4  ;;  %798 = vmatprep.subr.bf16.mxu1 %v922_v2  ;;  %v903_v29 = vld [vmem:[%s1189_s3 + $0xa0] sm:$0xff]   ;;  %v905_v30 = vld [vmem:[%s1189_s3 + $0xa8] sm:$0xff]   ;;  %v907_v32 = vld [vmem:[%s1189_s3 + $0xb0] sm:$0xff]  }
   0xb   :  { %201 = vmatprep.subr.bf16.mxu0 %v921_v0  ;;  %v908_v33 = vld [vmem:[%s1189_s3 + $0x38] sm:$0xff]   ;;  %v684_v35 = vld [vmem:[%s1192_s2] ss:$0 sm:$0xff]  ;;  %v911_v46 = vld [vmem:[%s1189_s3 + $0x48] sm:$0xff]  }
   0xc   :  { %v909_v34 = vld [vmem:[%s1189_s3 + $0xb8] sm:$0xff]   ;;  %v910_v44 = vld [vmem:[%s1189_s3 + $0x40] sm:$0xff]   ;;  %v912_v47 = vld [vmem:[%s1189_s3 + $0x50] sm:$0xff]  }
   0xd   :  { %799 = vmatpush3.bf16.msra.mxu1 %v898_v11  ;;  %v913_v48 = vld [vmem:[%s1189_s3 + $0x58] sm:$0xff]   ;;  %v914_v49 = vld [vmem:[%s1189_s3 + $0x60] sm:$0xff]   ;;  %v915_v50 = vld [vmem:[%s1189_s3 + $0x68] sm:$0xff]  }
   0xe   :  { %202 = vmatpush1.bf16.msra.mxu0 %v880_v5  ;;  %800 = vmatprep.subr.bf16.mxu1 %v922_v2  ;;  %v916_v51 = vld [vmem:[%s1189_s3 + $0x70] sm:$0xff]   ;;  %v917_v52 = vld [vmem:[%s1189_s3 + $0x78] sm:$0xff]   ;;  %v918_v53 = vld [vmem:[%s1190_s6] sm:$0xff]  }
   0xf   :  { %203 = vmatprep.subr.bf16.mxu0 %v921_v0  ;;  %v919_v54 = vld [vmem:[%s1190_s6 + $0x8] sm:$0xff]   ;;  %v920_v55 = vld [vmem:[%s1191_s5] sm:$0xff]  }
  0x11   :  { %801 = vmatpush3.bf16.msra.mxu1 %v900_v13 }
  0x12   :  { %204 = vmatpush1.bf16.msra.mxu0 %v881_v6  ;;  %802 = vmatprep.subr.bf16.mxu1 %v922_v2 }
  0x13   :  { %205 = vmatprep.subr.bf16.mxu0 %v921_v0 }
  0x15   :  { %803 = vmatpush3.bf16.msra.mxu1 %v902_v15 }
  0x16   :  { %206 = vmatpush1.bf16.msra.mxu0 %v882_v10  ;;  %804 = vmatprep.subr.bf16.mxu1 %v922_v2 }
  0x17   :  { %207 = vmatprep.subr.bf16.mxu0 %v921_v0 }
  0x19   :  { %805 = vmatpush3.bf16.msra.mxu1 %v904_v17 }
  0x1a   :  { %208 = vmatpush1.bf16.msra.mxu0 %v883_v12  ;;  %806 = vmatprep.subr.bf16.mxu1 %v922_v2 }
  0x1b   :  { %209 = vmatprep.subr.bf16.mxu0 %v921_v0 }
  0x1d   :  { %807 = vmatpush3.bf16.msra.mxu1 %v906_v31 }
  0x1e   :  { %210 = vmatpush1.bf16.msra.mxu0 %v884_v14  ;;  %808 = vmatprep.subr.bf16.mxu1 %v922_v2 }
  0x1f   :  { %211 = vmatprep.subr.bf16.mxu0 %v921_v0 }
  0x21   :  { %809 = vmatpush3.bf16.msra.mxu1 %v908_v33 }
  0x22   :  { %212 = vmatpush1.bf16.msra.mxu0 %v885_v16  ;;  %814 = vmatprep.subr.bf16.mxu1 %v922_v2 }
  0x23   :  { %213 = vmatprep.subr.bf16.mxu0 %v921_v0 }
  0x26   :  { %214 = vmatpush1.bf16.msra.mxu0 %v886_v18 }
  0x27   :  { %215 = vmatprep.subr.bf16.mxu0 %v921_v0 }
  0x2a   :  { %216 = vmatpush1.bf16.msra.mxu0 %v887_v19 }
  0x2b   :  { %217 = vmatprep.subr.bf16.mxu0 %v921_v0 }
  0x2e   :  { %218 = vmatpush1.bf16.msra.mxu0 %v888_v20 }
  0x2f   :  { %219 = vmatprep.subr.bf16.mxu0 %v921_v0 }
  0x32   :  { %220 = vmatpush1.bf16.msra.mxu0 %v889_v21 }
  0x33   :  { %221 = vmatprep.subr.bf16.mxu0 %v921_v0 }
  0x36   :  { %222 = vmatpush1.bf16.msra.mxu0 %v193_v23  ;;  %v758_v23 = vld [vmem:[%s1193_s4] ss:$0 sm:$0xff] }
  0x37   :  { %834 = vmatprep.subr.bf16.mxu0 %v922_v2 }
  0x39   :  { %228 = vmatmul.mubr.bf16.vlgmr.msra.gmra.mrb[0].mxu0 %v891_v24 }
  0x3a   :  { %835 = vmatpush3.bf16.msra.mxu0 %v895_v25  ;;  %850 = vmatprep.mubr.msk.bf16.mxu0 %vm923_vm2, %v922_v2  ;;  %v759_v25 = vld [vmem:[%s1194_s7] ss:$0 sm:$0xff] }
  0x3b   :  { %836 = vmatprep.subr.bf16.mxu0 %v922_v2 }
  0x3e   :  { %837 = vmatpush3.bf16.msra.mxu0 %v897_v26 }
  0x3f   :  { %838 = vmatprep.subr.bf16.mxu0 %v922_v2 }
  0x42   :  { %839 = vmatpush3.bf16.msra.mxu0 %v899_v27 }
  0x43   :  { %840 = vmatprep.subr.bf16.mxu0 %v922_v2 }
  0x46   :  { %841 = vmatpush3.bf16.msra.mxu0 %v901_v28 }
  0x47   :  { %842 = vmatprep.subr.bf16.mxu0 %v922_v2 }
  0x4a   :  { %843 = vmatpush3.bf16.msra.mxu0 %v903_v29 }
  0x4b   :  { %844 = vmatprep.subr.bf16.mxu0 %v922_v2 }
  0x4e   :  { %845 = vmatpush3.bf16.msra.mxu0 %v905_v30 }
  0x4f   :  { %846 = vmatprep.subr.bf16.mxu0 %v922_v2 }
  0x52   :  { %847 = vmatpush3.bf16.msra.mxu0 %v907_v32 }
  0x53   :  { %848 = vmatprep.subr.bf16.mxu0 %v922_v2 }
  0x56   :  { %849 = vmatpush3.bf16.msra.mxu0 %v909_v34 }
 0x10c   :  { %v229_v36 = vpop.f32.mrb[0].mxu0 }
 0x10d   :  { %v230_v37 = vadd.f32 %v684_v35, %v229_v36  ;;  %v231_v38 = vpop.f32.mrb[1].mxu0 }
 0x10e   :  { %v232_v39 = vpop.f32.mrb[2].mxu0 }
 0x10f   :  { %v233_v40 = vadd.f32 %v684_v35, %v232_v39  ;;  %v234_v41 = vpop.f32.mrb[3].mxu0  ;;  %v236_v42 = vmax.f32 %v230_v37, 0.0 }
 0x111   :  { %v237_v43 = vmax.f32 %v233_v40, 0.0 }
 0x113   :  { %v238_v45 = vpack.c.bf16 %v237_v43, %v236_v42 }
 0x115   :  { %811 = vmatmul.mubr.bf16.vlgmr.msra.gmra.mrb[0].mxu1 %v238_v45  ;;  %851 = vmatmul.mubr.bf16.vlgmr.msra.gmra.mrb[4].mxu0 %v238_v45 }
 0x116   :  { %815 = vmatpush3.bf16.msra.mxu1 %v910_v44  ;;  %830 = vmatprep.mubr.msk.bf16.mxu1 %vm923_vm2, %v922_v2 }
 0x117   :  { %816 = vmatprep.subr.bf16.mxu1 %v922_v2 }
 0x11a   :  { %817 = vmatpush3.bf16.msra.mxu1 %v911_v46 }
 0x11b   :  { %818 = vmatprep.subr.bf16.mxu1 %v922_v2 }
 0x11e   :  { %819 = vmatpush3.bf16.msra.mxu1 %v912_v47 }
 0x11f   :  { %820 = vmatprep.subr.bf16.mxu1 %v922_v2 }
 0x122   :  { %821 = vmatpush3.bf16.msra.mxu1 %v913_v48 }
 0x123   :  { %822 = vmatprep.subr.bf16.mxu1 %v922_v2 }
 0x126   :  { %823 = vmatpush3.bf16.msra.mxu1 %v914_v49 }
 0x127   :  { %824 = vmatprep.subr.bf16.mxu1 %v922_v2 }
 0x12a   :  { %825 = vmatpush3.bf16.msra.mxu1 %v915_v50 }
 0x12b   :  { %826 = vmatprep.subr.bf16.mxu1 %v922_v2 }
 0x12e   :  { %827 = vmatpush3.bf16.msra.mxu1 %v916_v51 }
 0x12f   :  { %828 = vmatprep.subr.bf16.mxu1 %v922_v2 }
 0x132   :  { %829 = vmatpush3.bf16.msra.mxu1 %v917_v52 }
 0x133   :  { %854 = vmatprep.subr.bf16.mxu1 %v922_v2 }
 0x135   :  { %831 = vmatmul.mubr.bf16.vlgmr.msra.gmra.mrb[4].mxu1 %v238_v45 }
 0x136   :  { %855 = vmatpush3.bf16.msra.mxu1 %v918_v53  ;;  %858 = vmatprep.mubr.msk.bf16.mxu1 %vm923_vm2, %v922_v2 }
 0x137   :  { %856 = vmatprep.subr.bf16.mxu1 %v922_v2 }
 0x13a   :  { %857 = vmatpush3.bf16.msra.mxu1 %v919_v54 }
 0x141   :  { %859 = vmatmul.mubr.msk.bf16.vlgmr.msra.gmra.mrb[4].mxu1 %vm629_vm3, %v920_v55 }
 0x1e8   :  { %v337_v61 = vpop.f32.mrb[0].mxu1  ;;  %v566_v62 = vpop.f32.mrb[4].mxu0 }
 0x1e9   :  { %v347_v0 = vrot.slane %v337_v61, 7  ;;  %v812_v1 = vpop.f32.mrb[1].mxu1  ;;  %v852_v2 = vpop.f32.mrb[5].mxu0  ;;  %v576_v9 = vrot.slane %v566_v62, 1 }
 0x1ea   :  { %v340_v3 = vpop.f32.mrb[2].mxu1  ;;  %v569_v7 = vpop.f32.mrb[6].mxu0 }
 0x1eb   :  { %v352_v8 = vsel %vm346_vm4, 0.0, %v347_v0  ;;  %v348_v10 = vrot.slane %v340_v3, 7  ;;  %v577_v11 = vrot.slane %v569_v7, 1  ;;  %v813_v12 = vpop.f32.mrb[3].mxu1  ;;  %v853_v13 = vpop.f32.mrb[7].mxu0 }
 0x1ec   :  { %v357_v17 = vsel %vm1149_vm5, 0.0, %v352_v8 }
 0x1ed   :  { %v349_v14 = vsel %vm346_vm4, %v347_v0, %v348_v10  ;;  %v578_v15 = vsel %vm575_vm9, %v576_v9, %v577_v11  ;;  %v581_v16 = vsel %vm575_vm9, %v577_v11, 0.0 }
 0x1ee   :  { %v358_v18 = vsel %vm1153_vm6, 0.0, %v349_v14  ;;  %v586_v19 = vsel %vm1157_vm7, 0.0, %v578_v15  ;;  %v587_v20 = vsel %vm1161_vm8, 0.0, %v581_v16 }
 0x1ef   :  { %v866_v21 = vadd.f32 %v587_v20, %v358_v18  ;;  %v862_v22 = vadd.f32 %v586_v19, %v357_v17 }
 0x1f1   :  { %v863_v24 = vadd.f32 %v862_v22, %v758_v23  ;;  %v867_v26 = vadd.f32 %v866_v21, %v758_v23 }
 0x1f3   :  { %v864_v27 = vadd.f32 %v863_v24, %v759_v25  ;;  %v868_v31 = vadd.f32 %v867_v26, %v759_v25 }
 0x214   :  { %v667_v28 = vpop.f32.mrb[4].mxu1 }
 0x215   :  { %v865_v29 = vadd.f32 %v864_v27, %v667_v28  ;;  %v860_v30 = vpop.f32.mrb[5].mxu1 }
 0x216   :  { %v670_v32 = vpop.f32.mrb[6].mxu1 }
 0x217   :  { %v676_v33 = vmax.f32 %v865_v29, 0.0  ;;  %v869_v34 = vadd.f32 %v868_v31, %v670_v32  ;;  %v861_v35 = vpop.f32.mrb[7].mxu1 }
 0x219   :  { %678 = vst [vmem:[%s1195_s8] sm:$0xff] %v676_v33  ;;  %v677_v36 = vmax.f32 %v869_v34, 0.0 }
 0x21b   :  { %679 = vst [vmem:[%s1195_s8 + $0x8] sm:$0xff] %v677_v36 }

</bundles_post_ra>
